<compile_context>
chip_gen: v6e
topology: v6e:2x2x1
jax: 0.10.0
libtpu: 0.0.40
codegen_flags: <defaults>
</compile_context>

<pallas_src>
import jax
import jax.numpy as jnp
from jax.experimental import pallas as pl
from jax.experimental.pallas import tpu as pltpu


def _pick_tile(n, preferred, align):
    """Largest t <= preferred with n % t == 0 and t % align == 0; else full n.

    Falling back to the full dimension is always legal (block == array dim is
    exempt from the (8, 128) divisibility rule)."""
    if n % align != 0 or n <= align:
        return n
    t = min(preferred, n)
    t -= t % align
    while t >= align:
        if n % t == 0:
            return t
        t -= align
    return n


def _device_vmem_and_kind():
    """Physical VMEM bytes and device-kind string; safe fallbacks if unavailable."""
    vmem = 64 * 1024 * 1024  # conservative default: fits every generation (v7x = 64 MiB)
    kind = ""
    try:
        vmem = int(pltpu.get_tpu_info().vmem_capacity_bytes)
    except Exception:
        pass
    try:
        kind = jax.devices()[0].device_kind.lower()
    except Exception:
        pass
    return vmem, kind


def mlp_module(x, w1, b1, w2, b2, *, tile_b=1024, tile_h=512, activation=None):
    """x:(B,D) w1:(D,H) b1:(H,) w2:(H,D) b2:(D,) -> (B,D) = x + act(x@W1+b1)@W2+b2."""
    B, D = x.shape
    Dw, H = w1.shape
    assert Dw == D and w2.shape == (H, D) and b1.shape == (H,) and b2.shape == (D,)
    # NOTE: for best store throughput D should be a multiple of 128 (lane-dense
    # output), ideally 256 for the v6e/v7x MXUs; pad features on the host for
    # odd real-world shapes.

    act = activation if activation is not None else (lambda v: jnp.maximum(v, 0.0))

    x_isz = x.dtype.itemsize
    w_isz = w1.dtype.itemsize
    out_dtype = x.dtype
    out_isz = jnp.dtype(out_dtype).itemsize

    use_oref_acc = (out_dtype == jnp.float32)   # accumulate straight into o_ref
    need_cast = (x.dtype != w1.dtype)           # hoisted x cast (once per batch tile)

    # Batch tile alignment = packed-sublane size of the input dtype
    # (f32: 8, bf16: 16, int8/fp8: 32).
    align_b = max(8, 32 // max(1, x_isz))
    # Hidden tile alignment: prefer 256 (v6e/v7x MXU depth) when shapes allow.
    align_h = 256 if (H % 256 == 0 and tile_h % 256 == 0) else 128

    vmem_cap, kind = _device_vmem_and_kind()
    vmem_budget = max(24 * 1024 * 1024, vmem_cap - 8 * 1024 * 1024)  # headroom

    tile_b = _pick_tile(B, tile_b, align_b)
    tile_h = _pick_tile(H, tile_h, align_h)

    # Only 2-TensorCore chips (v7x) benefit from >= 2 steps on the parallel axis;
    # on single-TC v5e/v6e halving tile_b just doubles weight re-streaming.
    if "v7" in kind and B // tile_b < 2 and B >= 2 * align_b:
        tile_b = _pick_tile(B, B // 2, align_b)

    def vmem_est(tb, th):
        est = (
            2 * tb * D * x_isz                 # x tiles (double-buffered)
            + 2 * tb * D * out_isz             # output tiles
            + 2 * D * th * w_isz               # W1 column blocks
            + 2 * th * D * w_isz               # W2 row blocks
            + 2 * th * w_isz + 2 * D * w_isz   # bias blocks
        )
        if not use_oref_acc:
            est += tb * D * 4                  # separate f32 accumulator
        if need_cast:
            est += tb * D * w_isz              # hoisted-cast x scratch
        return est

    # Fit the tiles into the device's real VMEM.  Shrink tile_h first (it only
    # affects step count / acc RMW traffic); keep tile_b large since it sets the
    # arithmetic intensity (weights re-streamed B/tile_b times).
    while vmem_est(tile_b, tile_h) > vmem_budget and tile_h > align_h:
        new_th = _pick_tile(H, max(align_h, tile_h // 2), align_h)
        if new_th >= tile_h:
            break
        tile_h = new_th
    while vmem_est(tile_b, tile_h) > vmem_budget and tile_b > align_b:
        new_tb = _pick_tile(B, max(align_b, tile_b // 2), align_b)
        if new_tb >= tile_b:
            break
        tile_b = new_tb

    est = vmem_est(tile_b, tile_h)
    # Estimate already includes double-buffering; add modest compiler-scratch
    # slack and clamp to the physical budget (critical on v7x's 64 MiB).
    vmem_limit = int(min(vmem_budget, max(32 * 1024 * 1024, est + (4 << 20))))

    b1_2d = b1.reshape(1, H)
    b2_2d = b2.reshape(1, D)

    def kernel(x_ref, w1_ref, b1_ref, w2_ref, b2_ref, o_ref, *scratch):
        s = list(scratch)
        acc_ref = o_ref if use_oref_acc else s.pop(0)
        xc_ref = s.pop(0) if need_cast else None

        k = pl.program_id(1)

        @pl.when(k == 0)
        def _init():
            acc_ref[...] = jnp.zeros_like(acc_ref)
            if need_cast:
                # Cast the x tile once per batch tile; reused for all k steps.
                xc_ref[...] = x_ref[...].astype(xc_ref.dtype)

        x_mm = xc_ref[...] if need_cast else x_ref[...]
        # First matmul: MXU operands in the weight dtype, f32 accumulation.
        h = jnp.dot(x_mm, w1_ref[...], preferred_element_type=jnp.float32)
        h = h + b1_ref[...].astype(jnp.float32)
        a = act(h)                                            # f32 elementwise
        # Second matmul: partial sum over this hidden-dim tile into the f32 acc.
        acc_ref[...] += jnp.dot(a.astype(w2_ref.dtype), w2_ref[...],
                                preferred_element_type=jnp.float32)

        @pl.when(k == pl.num_programs(1) - 1)
        def _finalize():
            y = acc_ref[...] + b2_ref[...].astype(jnp.float32)
            o_ref[...] = (x_ref[...].astype(jnp.float32) + y).astype(o_ref.dtype)

    scratch_shapes = []
    if not use_oref_acc:
        scratch_shapes.append(pltpu.VMEM((tile_b, D), jnp.float32))
    if need_cast:
        scratch_shapes.append(pltpu.VMEM((tile_b, D), w1.dtype))

    n_btiles = B // tile_b
    cost = pl.CostEstimate(
        flops=4 * B * D * H,              # two (B,D)x(D/H) matmuls, 2 flops/MAC
        transcendentals=0,
        bytes_accessed=int(x.nbytes + B * D * out_isz + b1.nbytes + b2.nbytes
                           + n_btiles * (w1.nbytes + w2.nbytes)),  # weights re-streamed
    )

    grid = (B // tile_b, H // tile_h)
    return pl.pallas_call(
        kernel,
        out_shape=jax.ShapeDtypeStruct((B, D), out_dtype),
        grid_spec=pltpu.PrefetchScalarGridSpec(
            num_scalar_prefetch=0,
            grid=grid,
            in_specs=[
                pl.BlockSpec((tile_b, D), lambda i, k: (i, 0)),   # x (k-invariant)
                pl.BlockSpec((D, tile_h), lambda i, k: (0, k)),   # W1 column block
                pl.BlockSpec((1, tile_h), lambda i, k: (0, k)),   # b1 block
                pl.BlockSpec((tile_h, D), lambda i, k: (k, 0)),   # W2 row block
                pl.BlockSpec((1, D),      lambda i, k: (0, 0)),   # b2 (resident)
            ],
            out_specs=pl.BlockSpec((tile_b, D), lambda i, k: (i, 0)),
            scratch_shapes=scratch_shapes,
        ),
        compiler_params=pltpu.CompilerParams(
            dimension_semantics=("parallel", "arbitrary"),
            vmem_limit_bytes=vmem_limit,
        ),
        cost_estimate=cost,
    )(x, w1, b1_2d, w2, b2_2d)


if __name__ == "__main__":
    # Small shapes consistent with the module: batch=256, in=128, hidden=256.
    B, D, H = 256, 128, 256
    key = jax.random.PRNGKey(0)
    kx, kw1, kb1, kw2, kb2 = jax.random.split(key, 5)

    x = jax.random.normal(kx, (B, D), dtype=jnp.float32)
    # Deterministic parameters (stand in for linear_1_data / linear_2_data).
    w1 = jax.random.normal(kw1, (D, H), dtype=jnp.float32) * 0.05
    b1 = jax.random.normal(kb1, (H,), dtype=jnp.float32) * 0.05
    w2 = jax.random.normal(kw2, (H, D), dtype=jnp.float32) * 0.05
    b2 = jax.random.normal(kb2, (D,), dtype=jnp.float32) * 0.05

    # Pure-JAX reference for the exact PyTorch forward semantics (ReLU activation).
    ref = x + (jnp.maximum(x @ w1 + b1, 0.0) @ w2 + b2)

    # 1) f32 run with explicit small tiles: exercises multi-step hidden-dim
    #    reduction with accumulation directly into the f32 output block.
    out = jax.block_until_ready(mlp_module(x, w1, b1, w2, b2, tile_b=128, tile_h=128))
    assert out.shape == (B, D)
    assert jnp.allclose(out, ref, atol=1e-4, rtol=1e-4), "f32 tiled mismatch"

    # 2) f32 run with default (auto, perf-oriented) tiles.
    out_d = jax.block_until_ready(mlp_module(x, w1, b1, w2, b2))
    assert jnp.allclose(out_d, ref, atol=1e-4, rtol=1e-4), "f32 default mismatch"

    # 3) bf16 everywhere: bf16 MXU operands, f32 accumulation in a scratch,
    #    bf16 output; loose tolerance.
    out_b = jax.block_until_ready(
        mlp_module(x.astype(jnp.bfloat16),
                   w1.astype(jnp.bfloat16), b1,
                   w2.astype(jnp.bfloat16), b2))
    assert jnp.allclose(out_b.astype(jnp.float32), ref, atol=0.15, rtol=0.05), \
        "bf16 mismatch"

    # 4) Mixed dtype: f32 activations/output with bf16 weights (exercises the
    #    hoisted one-time x cast path + f32 accumulation into o_ref).
    out_m = jax.block_until_ready(
        mlp_module(x, w1.astype(jnp.bfloat16), b1, w2.astype(jnp.bfloat16), b2))
    assert jnp.allclose(out_m, ref, atol=0.15, rtol=0.05), "mixed-dtype mismatch"

    print("KERNEL_OK")
</pallas_src>

<mosaic_0001>
module attributes {stable_mosaic.version = 11 : i64} {
  func.func @kernel(%arg0: i32, %arg1: i32, %arg2: memref<128x128xf32, #tpu.memory_space<vmem>>, %arg3: memref<128x128xf32, #tpu.memory_space<vmem>>, %arg4: memref<1x128xf32, #tpu.memory_space<vmem>>, %arg5: memref<128x128xf32, #tpu.memory_space<vmem>>, %arg6: memref<1x128xf32, #tpu.memory_space<vmem>>, %arg7: memref<128x128xf32, #tpu.memory_space<vmem>>) attributes {dimension_semantics = [#tpu.dimension_semantics<parallel>, #tpu.dimension_semantics<arbitrary>], iteration_bounds = array<i64: 2, 2>, scalar_prefetch = 0 : i64, scratch_operands = 0 : i64, tpu.core_type = #tpu.core_type<tc>, window_params = [{transform_indices = @transform_0, window_bounds = array<i64: 128, 128>}, {transform_indices = @transform_1, window_bounds = array<i64: 128, 128>}, {transform_indices = @transform_2, window_bounds = array<i64: 1, 128>}, {transform_indices = @transform_3, window_bounds = array<i64: 128, 128>}, {pipeline_mode = #tpu.pipeline_mode<synchronous>, transform_indices = @transform_4, window_bounds = array<i64: 1, 128>}, {transform_indices = @transform_5, window_bounds = array<i64: 128, 128>}]} {
    %c0_i32 = arith.constant 0 : i32
    %0 = arith.cmpi eq, %arg1, %c0_i32 : i32
    %1 = arith.extui %0 : i1 to i32
    %c0_i32_0 = arith.constant 0 : i32
    %2 = arith.cmpi ne, %1, %c0_i32_0 : i32
    scf.if %2 {
      %cst_15 = arith.constant 0.000000e+00 : f32
      %19 = vector.broadcast %cst_15 : f32 to vector<128x128xf32>
      %c0_16 = arith.constant 0 : index
      %c0_17 = arith.constant 0 : index
      %20 = vector.load %arg7[%c0_16, %c0_17] : memref<128x128xf32, #tpu.memory_space<vmem>>, vector<128x128xf32>
      tpu.vector_store %arg7[%c0_16, %c0_17], %19 {strides = array<i32>} : memref<128x128xf32, #tpu.memory_space<vmem>>, vector<128x128xf32>,
    } else {
    }
    %c0 = arith.constant 0 : index
    %c0_1 = arith.constant 0 : index
    %3 = vector.load %arg2[%c0, %c0_1] : memref<128x128xf32, #tpu.memory_space<vmem>>, vector<128x128xf32>
    %c0_2 = arith.constant 0 : index
    %c0_3 = arith.constant 0 : index
    %4 = vector.load %arg3[%c0_2, %c0_3] : memref<128x128xf32, #tpu.memory_space<vmem>>, vector<128x128xf32>
    %cst = arith.constant dense<0.000000e+00> : vector<128x128xf32>
    %5 = tpu.matmul %3, %4, %cst {dimension_numbers = #tpu.dot_dimension_numbers<[1], [0], [0], [1], [0, 0, 1, 1], [], []>} : vector<128x128xf32>, vector<128x128xf32>, vector<128x128xf32> -> vector<128x128xf32>
    %c0_4 = arith.constant 0 : index
    %c0_5 = arith.constant 0 : index
    %6 = vector.load %arg4[%c0_4, %c0_5] : memref<1x128xf32, #tpu.memory_space<vmem>>, vector<1x128xf32>
    %7 = vector.broadcast %6 : vector<1x128xf32> to vector<128x128xf32>
    %8 = arith.addf %5, %7 : vector<128x128xf32>
    %cst_6 = arith.constant 0.000000e+00 : f32
    %9 = vector.broadcast %cst_6 : f32 to vector<128x128xf32>
    %10 = arith.maximumf %8, %9 : vector<128x128xf32>
    %c0_7 = arith.constant 0 : index
    %c0_8 = arith.constant 0 : index
    %11 = vector.load %arg7[%c0_7, %c0_8] : memref<128x128xf32, #tpu.memory_space<vmem>>, vector<128x128xf32>
    %c0_9 = arith.constant 0 : index
    %c0_10 = arith.constant 0 : index
    %12 = vector.load %arg5[%c0_9, %c0_10] : memref<128x128xf32, #tpu.memory_space<vmem>>, vector<128x128xf32>
    %cst_11 = arith.constant dense<0.000000e+00> : vector<128x128xf32>
    %13 = tpu.matmul %10, %12, %cst_11 {dimension_numbers = #tpu.dot_dimension_numbers<[1], [0], [0], [1], [0, 0, 1, 1], [], []>} : vector<128x128xf32>, vector<128x128xf32>, vector<128x128xf32> -> vector<128x128xf32>
    %14 = arith.addf %11, %13 : vector<128x128xf32>
    %c0_12 = arith.constant 0 : index
    %c0_13 = arith.constant 0 : index
    %15 = vector.load %arg7[%c0_12, %c0_13] : memref<128x128xf32, #tpu.memory_space<vmem>>, vector<128x128xf32>
    tpu.vector_store %arg7[%c0_12, %c0_13], %14 {strides = array<i32>} : memref<128x128xf32, #tpu.memory_space<vmem>>, vector<128x128xf32>,
    %c1_i32 = arith.constant 1 : i32
    %16 = arith.cmpi eq, %arg1, %c1_i32 : i32
    %17 = arith.extui %16 : i1 to i32
    %c0_i32_14 = arith.constant 0 : i32
    %18 = arith.cmpi ne, %17, %c0_i32_14 : i32
    scf.if %18 {
      %c0_15 = arith.constant 0 : index
      %c0_16 = arith.constant 0 : index
      %19 = vector.load %arg7[%c0_15, %c0_16] : memref<128x128xf32, #tpu.memory_space<vmem>>, vector<128x128xf32>
      %c0_17 = arith.constant 0 : index
      %c0_18 = arith.constant 0 : index
      %20 = vector.load %arg6[%c0_17, %c0_18] : memref<1x128xf32, #tpu.memory_space<vmem>>, vector<1x128xf32>
      %21 = vector.broadcast %20 : vector<1x128xf32> to vector<128x128xf32>
      %22 = arith.addf %19, %21 : vector<128x128xf32>
      %c0_19 = arith.constant 0 : index
      %c0_20 = arith.constant 0 : index
      %23 = vector.load %arg2[%c0_19, %c0_20] : memref<128x128xf32, #tpu.memory_space<vmem>>, vector<128x128xf32>
      %24 = arith.addf %23, %22 : vector<128x128xf32>
      %c0_21 = arith.constant 0 : index
      %c0_22 = arith.constant 0 : index
      %25 = vector.load %arg7[%c0_21, %c0_22] : memref<128x128xf32, #tpu.memory_space<vmem>>, vector<128x128xf32>
      tpu.vector_store %arg7[%c0_21, %c0_22], %24 {strides = array<i32>} : memref<128x128xf32, #tpu.memory_space<vmem>>, vector<128x128xf32>,
    } else {
    }
    return
  }
  func.func @transform_0(%arg0: i32, %arg1: i32) -> (i32, i32) {
    %c0_i32 = arith.constant 0 : i32
    %c0_i32_0 = arith.constant 0 : i32
    return %arg0, %c0_i32 : i32, i32
  }
  func.func @transform_1(%arg0: i32, %arg1: i32) -> (i32, i32) {
    %c0_i32 = arith.constant 0 : i32
    %c0_i32_0 = arith.constant 0 : i32
    return %c0_i32, %arg1 : i32, i32
  }
  func.func @transform_2(%arg0: i32, %arg1: i32) -> (i32, i32) {
    %c0_i32 = arith.constant 0 : i32
    %c0_i32_0 = arith.constant 0 : i32
    return %c0_i32, %arg1 : i32, i32
  }
  func.func @transform_3(%arg0: i32, %arg1: i32) -> (i32, i32) {
    %c0_i32 = arith.constant 0 : i32
    %c0_i32_0 = arith.constant 0 : i32
    return %arg1, %c0_i32 : i32, i32
  }
  func.func @transform_4(%arg0: i32, %arg1: i32) -> (i32, i32) {
    %c0_i32 = arith.constant 0 : i32
    %c0_i32_0 = arith.constant 0 : i32
    %c0_i32_1 = arith.constant 0 : i32
    return %c0_i32, %c0_i32_0 : i32, i32
  }
  func.func @transform_5(%arg0: i32, %arg1: i32) -> (i32, i32) {
    %c0_i32 = arith.constant 0 : i32
    %c0_i32_0 = arith.constant 0 : i32
    return %arg0, %c0_i32 : i32, i32
  }
}

</mosaic_0001>

<bundles_post_ra>
// kernel: tpu_custom_call.1
= control target key start
LH: loop header
LB: loop body
LE: loop exit
PB: predicated region body
PF: predicated region fallthrough
CT: control target
= control target key end

     0   :  { %s2065_s0 = inlined_call_operand.hbm [shape: f32[256,128], index: 0, kind: input, shape index: {}]   ;;  %s2066_s1 = inlined_call_operand.hbm [shape: f32[128,256], index: 1, kind: input, shape index: {}]   ;;  %s2067_s2 = inlined_call_operand.vmem [shape: f32[1,256], index: 2, kind: input, shape index: {}]   ;;  %s2068_s3 = inlined_call_operand.hbm [shape: f32[256,128], index: 3, kind: input, shape index: {}]   ;;  %s2069_s4 = inlined_call_operand.vmem [shape: f32[1,128], index: 4, kind: input, shape index: {}]   ;;  %s2070_s5 = inlined_call_operand.hbm [shape: f32[256,128], index: 5, kind: output, shape index: {}]  }
   0x1   :  { %2085 = sst [smem:[#allocation21_spill]] %s2065_s0 }
   0x2   :  { %2086 = sst [smem:[#allocation22_spill]] %s2066_s1 }
   0x3   :  { %2087 = sst [smem:[#allocation23_spill]] %s2069_s4 }
   0x4   :  { %2088 = sst [smem:[#allocation24_spill]] %s2070_s5 }
   0x5   :  { %10 = vsyncpa [#allocation3], 0 }
   0x6   :  { %12 = vsyncpa [#allocation3 + $0x1], 0 }
   0x7   :  { %13 = vsyncpa [#allocation6], 0 }
   0x8   :  { %15 = vsyncpa [#allocation6 + $0x1], 0 }
   0x9   :  { %16 = vsyncpa [#allocation4], 0 }
   0xa   :  { %18 = vsyncpa [#allocation4 + $0x1], 0  ;;  %s1591_s18 = smov 0   ;;  %s1593_s19 = smov 0  }
   0xb   :  { %s1595_s20 = smov 0   ;;  %s1597_s21 = smov 0  }
   0xc   :  { %s1599_s22 = smov 0   ;;  %s1601_s23 = smov 0  }
   0xd   :  { %s1603_s24 = smov 0   ;;  %s1605_s25 = smov 0  }
   0xe   :  { %s1607_s26 = smov 0   ;;  %s1609_s27 = smov 0  }
   0xf   :  { %s1611_s28 = smov 0  }
  0x10 LB: > { %2089 = sst [smem:[#allocation12_spill]] %s1517_s20  ;;  %s33_s29 = sadd.s32 1, %s1541_s26  ;;  %s1549_s28 = sphi %s1611_s28, %s24_s28   ;;  %s1545_s27 = sphi %s1609_s27, %s2124_s27   ;;  %s1541_s26 = sphi %s1607_s26, %s2131_s26   ;;  %s1537_s25 = sphi %s1605_s25, %s2130_s25   ;;  %s1533_s24 = sphi %s1603_s24, %s2129_s24   ;;  %s1529_s23 = sphi %s1601_s23, %s2121_s23   ;;  %s1525_s22 = sphi %s1599_s22, %s2128_s22   ;;  %s1521_s21 = sphi %s1597_s21, %s2127_s21   ;;  %s1517_s20 = sphi %s1595_s20, %s2119_s20   ;;  %s1513_s19 = sphi %s1593_s19, %s2126_s19   ;;  %s1509_s18 = sphi %s1591_s18, %s2125_s18  }
  0x11   : > { %2090 = sst [smem:[#allocation13_spill]] %s1529_s23  ;;  %p51_p0 = scmp.eq.s32.totalorder %s1549_s28, 0 }
  0x12   : > { %2091 = sst [smem:[#allocation14_spill]] %s1537_s25  ;;  %p1648_p1 = scmp.ge.s32.totalorder %s33_s29, 2 }
  0x13   : > { %2092 = sst [smem:[#allocation15_spill]] %s1545_s27  ;;  %s69_s6 = sadd.s32 1, %s1517_s20 }
  0x14   : > { %p76_p2 = scmp.ne.s32.totalorder %s1517_s20, %s1513_s19  ;;  %p82_p3 = scmp.ne.s32.totalorder %s1513_s19, %s1509_s18 }
  0x15   : > { %s2133_s29 = smov (%p1648_p1, %s33_s29), 0  ;;  %p2075_p5 = scmp.lt.s32.totalorder %s1549_s28, 4 }
  0x16   : > { %2094 = sst [smem:[#allocation16_spill]] %s2133_s29  ;;  %p78_p4 = por %p76_p2, %p51_p0 }
  0x17   : > { %s66_s7 = ssub.s32 %s1541_s26, %s2133_s29  ;;  %s229_s8 = sand.u32 1, %s1549_s28  }
  0x18   : > { %p67_p6 = scmp.eq.s32.totalorder %s66_s7, 0  ;;  %s231_s10 = sand.u32 1, %s1517_s20  }
  0x19   : > { %s1671_s11 = sshll.u32 %s231_s10, 7  ;;  %s1026_s12 = sshll.u32 %s1541_s26, 7 }
  0x1a   : > { %s1668_s9 = scalar_select %p67_p6, %s1517_s20, %s69_s6  }
  0x1b   : > { %s2096_s1 = sld [smem:[#allocation22_spill]]  ;;  %s233_s16 = scalar_lea.vmem [#allocation5], %s1671_s11 }
  0x1c   : > { %2095 = sst [smem:[#allocation17_spill]] %s1668_s9  ;;  %s239_s17 = sshll.u32 %s233_s16, 4  ;;  %s240_s17 = int_to_ptr.vmem [resolvable:$true] %s239_s17 }
  0x1d   : > { %p1680_p7 = pnand %p2075_p5, %p78_p4  ;;  %p1030_p8 = scmp.ge.s32.totalorder %s1549_s28, 1 }
  0x1e   : > { %s1685_s6 = scalar_lea.sflag [#allocation6], %s229_s8  ;;  %s1354_s7 = scalar_lea.vmem %s240_s17, 2048 }
  0x1f   : > { %p2074_p9 = pneg %p1680_p7  ;;  %p1355_p10 = scmp.ne.s32.totalorder %s240_s17, %s1354_s7 }
  0x20   : > { %s1551_s10 = smov [#allocation5]  }
  0x21   : > { %s238_s15 = scalar_lea.hbm %s2096_s1, %s1026_s12  ;;  %p1357_p11 = pnand %p1355_p10, %p2074_p9 }
  0x22   : > { %s1359_s12 = sshll.u32 %s1551_s10, 4  ;;  %s1360_s12 = int_to_ptr.vmem [resolvable:$false] %s1359_s12 }
  0x23   : > { %p1358_p12 = pneg %p1357_p11  ;;  %s1361_s13 = scalar_lea.vmem %s1360_s12, 4096 }
  0x24   : > { %p1362_p13 = scmp.lt.s32.totalorder %s240_s17, %s1360_s12  ;;  %p1363_p2 = scmp.lt.s32.totalorder %s1361_s13, %s1354_s7 }
  0x26   : > { %p1364_p4 = por %p1363_p2, %p1362_p13 }
  0x28   : > { %p1365_p6 = pnand %p1364_p4, %p1358_p12 }
  0x2a   : > { %1368 = shalt.err (!%p1365_p6)
}
  0x2b   : > { %s1552_s14 = smov 256   ;;  %s2072_s8 = smov 128  }
  0x2c   : > { %s2076_s16 = smov 8   ;;  %p274_p10 = scmp.lt.s32.totalorder %s1549_s28, 5 }
  0x2d   : > { %1237 = dma.hbm_to_vmem [thread:$0]  (!%p1680_p7), %s238_s15, 2048, %s240_s17, %s1685_s6, %s1552_s14, %s2072_s8, %s2076_s16  }
  0x2e   : > { %p1700_p11 = pnand %p1030_p8, %p274_p10  ;;  %s1705_s10 = sadd.s32 4294967295, %s1549_s28  }
  0x2f   : > { %s1019_s12 = sadd.s32 4294967294, %s1549_s28   ;;  %s36_s13 = sadd.s32 1, %s1545_s27 }
  0x30   : > { %s43_s1 = sadd.s32 1, %s1529_s23  ;;  %s2135_s13 = smov (!%p1648_p1, %s36_s13), %s1545_s27 }
  0x31   : > { %p50_p12 = scmp.ne.s32.totalorder %s1529_s23, %s1525_s22  ;;  %p56_p13 = scmp.ne.s32.totalorder %s1525_s22, %s1521_s21 }
  0x32   : > { %p38_p8 = scmp.ge.s32.totalorder %s2135_s13, 2  ;;  %p57_p2 = scmp.eq.s32.totalorder %s1705_s10, 0 }
  0x33   : > { %p1720_p4 = por %p51_p0, %p50_p12  ;;  %p179_p6 = scmp.eq.s32.totalorder %s1705_s10, 3 }
  0x34   : > { %s2137_s13 = smov (%p38_p8, %s2135_s13), 0  ;;  %p1730_p1 = por %p57_p2, %p56_p13 }
  0x35   : > { %2100 = sst [smem:[#allocation18_spill]] %s2137_s13  ;;  %p1737_p10 = por %p82_p3, %p57_p2 }
  0x36   : > { %s40_s14 = ssub.s32 %s1545_s27, %s2137_s13  ;;  %p1743_p0 = por %p179_p6, %p50_p12 }
  0x37   : > { %p41_p9 = scmp.eq.s32.totalorder %s40_s14, 0  ;;  %p185_p5 = scmp.eq.s32.totalorder %s1019_s12, 3 }
  0x38   : > { %s2103_s8 = scalar_select %p1743_p0, 1, 0 }
  0x39   : > { %s208_s16 = sand.u32 1, %s1529_s23   ;;  %s1044_s29 = sshll.u32 %s1545_s27, 11 }
  0x3a   : > { %2104 = sst [smem:[#allocation19_spill]] %s2103_s8  ;;  %p1755_p8 = por %p185_p5, %p56_p13 }
  0x3b   : > { %s1750_s9 = scalar_select %p41_p9, %s1529_s23, %s43_s1  }
  0x3c   : > { %s2106_s20 = scalar_select %p1755_p8, 1, 0 }
  0x3d   : > { %2105 = sst [smem:[#allocation20_spill]] %s1750_s9  ;;  %s1022_s18 = sshll.u32 %s208_s16, 7 }
  0x3e   : > { %s2107_s0 = sld [smem:[#allocation21_spill]]  ;;  %p2108_p3 = scmp.lt.s32.totalorder %s1549_s28, 4 }
  0x3f   : > { %s212_s12 = scalar_lea.vmem [#allocation2], %s1022_s18  ;;  %s209_s14 = scalar_lea.sflag [#allocation3], %s208_s16 }
  0x40   : > { %p1766_p12 = pnand %p2108_p3, %p1720_p4  ;;  %s219_s1 = sshll.u32 %s212_s12, 4  ;;  %s220_s1 = int_to_ptr.vmem [resolvable:$true] %s219_s1 }
  0x41   : > { %s1382_s27 = scalar_lea.vmem %s220_s1, 2048  ;;  %s1555_s9 = smov [#allocation2]  }
  0x42   : > { %p1371_p5 = pneg %p1766_p12  ;;  %p1383_p9 = scmp.ne.s32.totalorder %s220_s1, %s1382_s27 }
  0x43   : > { %s1387_s4 = sshll.u32 %s1555_s9, 4  ;;  %s1388_s4 = int_to_ptr.vmem [resolvable:$false] %s1387_s4 }
  0x44   : > { %s218_s13 = scalar_lea.hbm %s2107_s0, %s1044_s29  ;;  %p1385_p13 = pnand %p1383_p9, %p1371_p5 }
  0x45   : > { %s1389_s25 = scalar_lea.vmem %s1388_s4, 4096  ;;  %p1390_p6 = scmp.lt.s32.totalorder %s220_s1, %s1388_s4 }
  0x46   : > { %p1386_p2 = pneg %p1385_p13  ;;  %p1391_p4 = scmp.lt.s32.totalorder %s1389_s25, %s1382_s27 }
  0x48   : > { %p1392_p3 = por %p1391_p4, %p1390_p6 }
  0x4a   : > { %p1393_p8 = pnand %p1392_p3, %p1386_p2 }
  0x4c   : > { %1396 = shalt.err (!%p1393_p8)
}
  0x4d   : > { %s2110_s29 = smov 8   ;;  %s2111_s15 = smov 128  }
  0x4e   : > { %1234 = dma.hbm_to_vmem [thread:$0]  (!%p1766_p12), %s218_s13, 2048, %s220_s1, %s209_s14, %s2111_s15, %s2111_s15, %s2110_s29  }
  0x4f   : > { %s1045_s16 = sshll.u32 %s1541_s26, 11  ;;  %s259_s18 = scalar_lea.vmem [#allocation7], %s1671_s11 }
  0x50   : > { %s266_s12 = sshll.u32 %s259_s18, 4  ;;  %s265_s4 = scalar_lea.hbm %s2068_s3, %s1045_s16  ;;  %s267_s12 = int_to_ptr.vmem [resolvable:$true] %s266_s12 }
  0x51   : > { %s1410_s27 = scalar_lea.vmem %s267_s12, 2048  ;;  %p2112_p8 = pneg %p1680_p7 }
  0x52   : > { %p1411_p5 = scmp.ne.s32.totalorder %s267_s12, %s1410_s27  ;;  %s1556_s8 = smov [#allocation7]  }
  0x53   : > { %s1415_s25 = sshll.u32 %s1556_s8, 4  ;;  %s1416_s25 = int_to_ptr.vmem [resolvable:$false] %s1415_s25 }
  0x54   : > { %p1413_p9 = pnand %p1411_p5, %p2112_p8  ;;  %s1417_s23 = scalar_lea.vmem %s1416_s25, 4096 }
  0x55   : > { %p1418_p2 = scmp.lt.s32.totalorder %s267_s12, %s1416_s25  ;;  %p1419_p12 = scmp.lt.s32.totalorder %s1417_s23, %s1410_s27 }
  0x56   : > { %p1414_p13 = pneg %p1413_p9 }
  0x57   : > { %p1420_p6 = por %p1419_p12, %p1418_p2 }
  0x59   : > { %p1421_p4 = pnand %p1420_p6, %p1414_p13 }
  0x5b   : > { %1424 = shalt.err (!%p1421_p4)
}
  0x5c   : > { %1240 = dma.hbm_to_vmem [thread:$0]  (!%p1680_p7), %s265_s4, 2048, %s267_s12, %s1685_s6, %s2111_s15, %s2111_s15, %s2110_s29  }
  0x5d   : > { %278 = sbr.rel (%p1700_p11) target bundleno = 621 (0x26d), region = 40  ;;  %s1794_s0 = sand.u32 (!%p1700_p11), 1, %s1525_s22  }
  0x5e   : > { %s1031_s23 = sshll.u32 (!%p1700_p11), %s1794_s0, 7  ;;  %s281_s11 = scalar_lea.sflag (!%p1700_p11), [#allocation3], %s1794_s0 }
  0x5f   : > { %s1798_s13 = scalar_lea.vmem (!%p1700_p11), [#allocation2], %s1031_s23 }
  0x62   : > { %1496 = dma.done.wait (%p1730_p1), %s281_s11, 2048  }
  0x63   : > { %1498 = vsyncadd (%p1730_p1), %s281_s11, 4294965248  ;;  %s289_s5 = sand.u32 1, %s1705_s10   ;;  %s291_s6 = sand.u32 1, %s1513_s19  }
  0x64   : > { %s1032_s7 = sshll.u32 %s291_s6, 7  ;;  %s290_s1 = scalar_lea.sflag [#allocation6], %s289_s5 }
  0x65   : > { %s1806_s14 = scalar_lea.vmem [#allocation5], %s1032_s7 }
  0x66   : > { %1500 = dma.done.wait (%p1737_p10), %s290_s1, 4096  }
  0x67   : > { %1502 = vsyncadd (%p1737_p10), %s290_s1, 4294963200  ;;  %p343_p7 = scmp.lt.s32.totalorder %s1533_s24, 1  ;;  %s1820_s16 = scalar_lea.vmem [#allocation7], %s1032_s7 }
  0x68   : > { %s1822_s18 = scalar_lea.vmem [#allocation8], %s1031_s23  ;;  %p1035_p11 = scmp.ne.s32.totalorder %s1533_s24, 0 }
  0x69   : > { %s1814_s29 = scalar_select %p343_p7, %s1533_s24, 1 }
  0x6a   : > { %351 = sbr.rel (%p1035_p11) target bundleno = 120 (0x78), region = 56 }
  0x6b   : > { %s345_s10 = scalar_lea.vmem %s2067_s2, %s1814_s29 }
  0x6f   : > { %v1557_v0 = vmov 0.0  }
  0x70   : > { %352 = vst [vmem:[%s1822_s18] sm:$0xff] %v1557_v0  ;;  %353 = vst [vmem:[%s1822_s18 + $0x8] sm:$0xff] %v1557_v0 }
  0x71   : > { %354 = vst [vmem:[%s1822_s18 + $0x10] sm:$0xff] %v1557_v0  ;;  %355 = vst [vmem:[%s1822_s18 + $0x18] sm:$0xff] %v1557_v0 }
  0x72   : > { %356 = vst [vmem:[%s1822_s18 + $0x20] sm:$0xff] %v1557_v0  ;;  %357 = vst [vmem:[%s1822_s18 + $0x28] sm:$0xff] %v1557_v0 }
  0x73   : > { %358 = vst [vmem:[%s1822_s18 + $0x30] sm:$0xff] %v1557_v0  ;;  %359 = vst [vmem:[%s1822_s18 + $0x38] sm:$0xff] %v1557_v0 }
  0x74   : > { %360 = vst [vmem:[%s1822_s18 + $0x40] sm:$0xff] %v1557_v0  ;;  %361 = vst [vmem:[%s1822_s18 + $0x48] sm:$0xff] %v1557_v0 }
  0x75   : > { %362 = vst [vmem:[%s1822_s18 + $0x50] sm:$0xff] %v1557_v0  ;;  %363 = vst [vmem:[%s1822_s18 + $0x58] sm:$0xff] %v1557_v0 }
  0x76   : > { %364 = vst [vmem:[%s1822_s18 + $0x60] sm:$0xff] %v1557_v0  ;;  %365 = vst [vmem:[%s1822_s18 + $0x68] sm:$0xff] %v1557_v0 }
  0x77   : > { %366 = vst [vmem:[%s1822_s18 + $0x70] sm:$0xff] %v1557_v0  ;;  %367 = vst [vmem:[%s1822_s18 + $0x78] sm:$0xff] %v1557_v0 }
  0x78 PF: > { %v399_v1 = vld [vmem:[%s1806_s14 + $0x78] sm:$0xff]  ;;  %v398_v2 = vld [vmem:[%s1806_s14 + $0x70] sm:$0xff]  ;;  %v397_v3 = vld [vmem:[%s1806_s14 + $0x68] sm:$0xff]  ;;  %p1037_p1 = scmp.ne.s32.totalorder %s1533_s24, 1 }
  0x79   : > { %1111 = vmatprep.subr.mxu0 %v399_v1  ;;  %v396_v4 = vld [vmem:[%s1806_s14 + $0x60] sm:$0xff]  ;;  %v395_v6 = vld [vmem:[%s1806_s14 + $0x58] sm:$0xff]  ;;  %v394_v7 = vld [vmem:[%s1806_s14 + $0x50] sm:$0xff]  ;;  %s2113_s27 = sld [smem:[#allocation23_spill]] (!%p1037_p1) }
  0x7a   : > { %1112 = vmatpush3.msra.mxu0 %v399_v1  ;;  %v368_v5 = vld [vmem:[%s1798_s13] sm:$0xff]  ;;  %v393_v8 = vld [vmem:[%s1806_s14 + $0x48] sm:$0xff]  ;;  %v599_v9 = vld [vmem:[%s1820_s16 + $0x78] sm:$0xff] }
  0x7b   : > { %1113 = vmatprep.subr.mxu0 %v398_v2  ;;  %1143 = vmatprep.mubr.f32.mxu0 %v368_v5  ;;  %v598_v10 = vld [vmem:[%s1820_s16 + $0x70] sm:$0xff]  ;;  %v392_v11 = vld [vmem:[%s1806_s14 + $0x40] sm:$0xff]  ;;  %v597_v12 = vld [vmem:[%s1820_s16 + $0x68] sm:$0xff] }
  0x7c   : > { %1114 = vmatpush3.msra.mxu0 %v398_v2  ;;  %1167 = vmatprep.subr.mxu1 %v599_v9  ;;  %v391_v13 = vld [vmem:[%s1806_s14 + $0x38] sm:$0xff]  ;;  %v596_v14 = vld [vmem:[%s1820_s16 + $0x60] sm:$0xff]  ;;  %v390_v15 = vld [vmem:[%s1806_s14 + $0x30] sm:$0xff] }
  0x7d   : > { %1115 = vmatprep.subr.mxu0 %v397_v3  ;;  %1168 = vmatpush3.msra.mxu1 %v599_v9  ;;  %v595_v16 = vld [vmem:[%s1820_s16 + $0x58] sm:$0xff]  ;;  %v389_v17 = vld [vmem:[%s1806_s14 + $0x28] sm:$0xff]  ;;  %v594_v18 = vld [vmem:[%s1820_s16 + $0x50] sm:$0xff] }
  0x7e   : > { %1116 = vmatpush3.msra.mxu0 %v397_v3  ;;  %1169 = vmatprep.subr.mxu1 %v598_v10  ;;  %v388_v19 = vld [vmem:[%s1806_s14 + $0x20] sm:$0xff]  ;;  %v593_v20 = vld [vmem:[%s1820_s16 + $0x48] sm:$0xff]  ;;  %v387_v21 = vld [vmem:[%s1806_s14 + $0x18] sm:$0xff] }
  0x7f   : > { %1117 = vmatprep.subr.mxu0 %v396_v4  ;;  %1170 = vmatpush3.msra.mxu1 %v598_v10  ;;  %v592_v22 = vld [vmem:[%s1820_s16 + $0x40] sm:$0xff]  ;;  %v386_v23 = vld [vmem:[%s1806_s14 + $0x10] sm:$0xff]  ;;  %v591_v24 = vld [vmem:[%s1820_s16 + $0x38] sm:$0xff] }
  0x80   : > { %1118 = vmatpush3.msra.mxu0 %v396_v4  ;;  %1171 = vmatprep.subr.mxu1 %v597_v12  ;;  %v385_v25 = vld [vmem:[%s1806_s14 + $0x8] sm:$0xff]  ;;  %v590_v26 = vld [vmem:[%s1820_s16 + $0x30] sm:$0xff]  ;;  %v384_v27 = vld [vmem:[%s1806_s14] sm:$0xff] }
  0x81   : > { %1119 = vmatprep.subr.mxu0 %v395_v6  ;;  %1172 = vmatpush3.msra.mxu1 %v597_v12  ;;  %v589_v28 = vld [vmem:[%s1820_s16 + $0x28] sm:$0xff]  ;;  %v588_v30 = vld [vmem:[%s1820_s16 + $0x20] sm:$0xff]  ;;  %v370_v31 = vld [vmem:[%s1798_s13 + $0x10] sm:$0xff] }
  0x82   : > { %1120 = vmatpush3.msra.mxu0 %v395_v6  ;;  %1173 = vmatprep.subr.mxu1 %v596_v14  ;;  %v369_v29 = vld [vmem:[%s1798_s13 + $0x8] sm:$0xff]  ;;  %v371_v32 = vld [vmem:[%s1798_s13 + $0x18] sm:$0xff]  ;;  %v372_v33 = vld [vmem:[%s1798_s13 + $0x20] sm:$0xff] }
  0x83   : > { %1121 = vmatprep.subr.mxu0 %v394_v7  ;;  %1174 = vmatpush3.msra.mxu1 %v596_v14  ;;  %v373_v34 = vld [vmem:[%s1798_s13 + $0x28] sm:$0xff]  ;;  %v374_v35 = vld [vmem:[%s1798_s13 + $0x30] sm:$0xff]  ;;  %v375_v36 = vld [vmem:[%s1798_s13 + $0x38] sm:$0xff] }
  0x84   : > { %1122 = vmatpush3.msra.mxu0 %v394_v7  ;;  %1175 = vmatprep.subr.mxu1 %v595_v16  ;;  %v376_v37 = vld [vmem:[%s1798_s13 + $0x40] sm:$0xff]  ;;  %v377_v38 = vld [vmem:[%s1798_s13 + $0x48] sm:$0xff]  ;;  %v378_v39 = vld [vmem:[%s1798_s13 + $0x50] sm:$0xff] }
  0x85   : > { %1123 = vmatprep.subr.mxu0 %v393_v8  ;;  %1176 = vmatpush3.msra.mxu1 %v595_v16  ;;  %v379_v40 = vld [vmem:[%s1798_s13 + $0x58] sm:$0xff]  ;;  %v380_v41 = vld [vmem:[%s1798_s13 + $0x60] sm:$0xff]  ;;  %v381_v42 = vld [vmem:[%s1798_s13 + $0x68] sm:$0xff] }
  0x86   : > { %1124 = vmatpush3.msra.mxu0 %v393_v8  ;;  %1177 = vmatprep.subr.mxu1 %v594_v18  ;;  %v382_v43 = vld [vmem:[%s1798_s13 + $0x70] sm:$0xff]  ;;  %v383_v44 = vld [vmem:[%s1798_s13 + $0x78] sm:$0xff]  ;;  %v585_v47 = vld [vmem:[%s1820_s16 + $0x8] sm:$0xff] }
  0x87   : > { %1125 = vmatprep.subr.mxu0 %v392_v11  ;;  %1178 = vmatpush3.msra.mxu1 %v594_v18  ;;  %v587_v45 = vld [vmem:[%s1820_s16 + $0x18] sm:$0xff]  ;;  %v586_v46 = vld [vmem:[%s1820_s16 + $0x10] sm:$0xff]  ;;  %v584_v48 = vld [vmem:[%s1820_s16] sm:$0xff] }
  0x88   : > { %1126 = vmatpush3.msra.mxu0 %v392_v11  ;;  %1179 = vmatprep.subr.mxu1 %v593_v20  ;;  %v1036_v49 = vld [vmem:[%s345_s10] ss:$0 sm:$0xff] }
  0x89   : > { %1127 = vmatprep.subr.mxu0 %v391_v13  ;;  %1180 = vmatpush3.msra.mxu1 %v593_v20 }
  0x8a   : > { %1128 = vmatpush3.msra.mxu0 %v391_v13  ;;  %1181 = vmatprep.subr.mxu1 %v592_v22 }
  0x8b   : > { %1129 = vmatprep.subr.mxu0 %v390_v15  ;;  %1182 = vmatpush3.msra.mxu1 %v592_v22 }
  0x8c   : > { %1130 = vmatpush3.msra.mxu0 %v390_v15  ;;  %1183 = vmatprep.subr.mxu1 %v591_v24 }
  0x8d   : > { %1131 = vmatprep.subr.mxu0 %v389_v17  ;;  %1184 = vmatpush3.msra.mxu1 %v591_v24 }
  0x8e   : > { %1132 = vmatpush3.msra.mxu0 %v389_v17  ;;  %1185 = vmatprep.subr.mxu1 %v590_v26 }
  0x8f   : > { %1133 = vmatprep.subr.mxu0 %v388_v19  ;;  %1186 = vmatpush3.msra.mxu1 %v590_v26 }
  0x90   : > { %1134 = vmatpush3.msra.mxu0 %v388_v19  ;;  %1187 = vmatprep.subr.mxu1 %v589_v28 }
  0x91   : > { %1135 = vmatprep.subr.mxu0 %v387_v21  ;;  %1188 = vmatpush3.msra.mxu1 %v589_v28 }
  0x92   : > { %1136 = vmatpush3.msra.mxu0 %v387_v21  ;;  %1189 = vmatprep.subr.mxu1 %v588_v30 }
  0x93   : > { %1137 = vmatprep.subr.mxu0 %v386_v23  ;;  %1190 = vmatpush3.msra.mxu1 %v588_v30 }
  0x94   : > { %1138 = vmatpush3.msra.mxu0 %v386_v23  ;;  %1191 = vmatprep.subr.mxu1 %v587_v45 }
  0x95   : > { %1139 = vmatprep.subr.mxu0 %v385_v25  ;;  %1192 = vmatpush3.msra.mxu1 %v587_v45  ;;  %v573_v45 = vld [vmem:[%s1822_s18 + $0x28] sm:$0xff] }
  0x96   : > { %1140 = vmatpush3.msra.mxu0 %v385_v25  ;;  %1193 = vmatprep.subr.mxu1 %v586_v46 }
  0x97   : > { %1141 = vmatprep.subr.mxu0 %v384_v27  ;;  %1194 = vmatpush3.msra.mxu1 %v586_v46 }
  0x98   : > { %1142 = vmatpush3.msra.mxu0 %v384_v27  ;;  %1195 = vmatprep.subr.mxu1 %v585_v47 }
  0x99   : > { %1144 = vmatmul.mubr.f32.vlgmr.msra.gmra.mxu0 %v369_v29  ;;  %1196 = vmatpush3.msra.mxu1 %v585_v47 }
  0x9a   : > { %1146 = vmatprep.mubr.f32.mxu0 %v370_v31  ;;  %1197 = vmatprep.subr.mxu1 %v584_v48 }
  0x9b   : > { %1198 = vmatpush3.msra.mxu1 %v584_v48  ;;  %v572_v48 = vld [vmem:[%s1822_s18 + $0x20] sm:$0xff] }
  0x9d   : > { %1147 = vmatmul.mubr.f32.gmra.mxu0 %v371_v32 }
  0x9e   : > { %1149 = vmatprep.mubr.f32.mxu0 %v372_v33 }
  0xa1   : > { %1150 = vmatmul.mubr.f32.gmra.mxu0 %v373_v34  ;;  %v569_v34 = vld [vmem:[%s1822_s18 + $0x8] sm:$0xff] }
  0xa2   : > { %1152 = vmatprep.mubr.f32.mxu0 %v374_v35 }
  0xa5   : > { %1153 = vmatmul.mubr.f32.gmra.mxu0 %v375_v36  ;;  %v568_v36 = vld [vmem:[%s1822_s18] sm:$0xff] }
  0xa6   : > { %1155 = vmatprep.mubr.f32.mxu0 %v376_v37 }
  0xa9   : > { %1156 = vmatmul.mubr.f32.gmra.mxu0 %v377_v38 }
  0xaa   : > { %1158 = vmatprep.mubr.f32.mxu0 %v378_v39  ;;  %v571_v39 = vld [vmem:[%s1822_s18 + $0x18] sm:$0xff] }
  0xad   : > { %1159 = vmatmul.mubr.f32.gmra.mxu0 %v379_v40 }
  0xae   : > { %1161 = vmatprep.mubr.f32.mxu0 %v380_v41 }
  0xb1   : > { %1162 = vmatmul.mubr.f32.gmra.mxu0 %v381_v42  ;;  %v570_v42 = vld [vmem:[%s1822_s18 + $0x10] sm:$0xff] }
  0xb2   : > { %1164 = vmatprep.mubr.f32.mxu0 %v382_v43 }
  0xb5   : > { %1165 = vmatmul.mubr.f32.gmra.mxu0 %v383_v44 }
 0x159   : > { %v1145_v50 = vpop.f32.mrf.mxu0 }
 0x15a   : > { %v479_v51 = vadd.f32 %v1145_v50, %v1036_v49 }
 0x15b   : > { %v473_v52 = vpop.f32.mrf.mxu0 }
 0x15c   : > { %v474_v53 = vadd.f32 %v1036_v49, %v473_v52  ;;  %v553_v56 = vmax.f32 %v479_v51, 0.0  ;;  %v575_v51 = vld [vmem:[%s1822_s18 + $0x38] sm:$0xff] }
 0x15d   : > { %v1148_v54 = vpop.f32.mrf.mxu0 }
 0x15e   : > { %v552_v55 = vmax.f32 %v474_v53, 0.0  ;;  %v489_v57 = vadd.f32 %v1148_v54, %v1036_v49  ;;  %v574_v54 = vld [vmem:[%s1822_s18 + $0x30] sm:$0xff] }
 0x15f   : > { %v483_v58 = vpop.f32.mrf.mxu0 }
 0x160   : > { %v484_v59 = vadd.f32 %v1036_v49, %v483_v58  ;;  %1199 = vmatprep.mubr.f32.mxu1 %v552_v55  ;;  %v555_v62 = vmax.f32 %v489_v57, 0.0  ;;  %v577_v57 = vld [vmem:[%s1822_s18 + $0x48] sm:$0xff] }
 0x161   : > { %v1151_v60 = vpop.f32.mrf.mxu0  ;;  %1200 = vmatmul.mubr.f32.vlgmr.msra.gmra.mxu1 %v553_v56 }
 0x162   : > { %v554_v61 = vmax.f32 %v484_v59, 0.0  ;;  %v499_v63 = vadd.f32 %v1151_v60, %v1036_v49  ;;  %v576_v60 = vld [vmem:[%s1822_s18 + $0x40] sm:$0xff] }
 0x163   : > { %v493_v0 = vpop.f32.mrf.mxu0 }
 0x164   : > { %v494_v1 = vadd.f32 %v1036_v49, %v493_v0  ;;  %1202 = vmatprep.mubr.f32.mxu1 %v554_v61  ;;  %v557_v4 = vmax.f32 %v499_v63, 0.0  ;;  %v579_v63 = vld [vmem:[%s1822_s18 + $0x58] sm:$0xff] }
 0x165   : > { %v1154_v2 = vpop.f32.mrf.mxu0  ;;  %1203 = vmatmul.mubr.f32.gmra.mxu1 %v555_v62 }
 0x166   : > { %v556_v3 = vmax.f32 %v494_v1, 0.0  ;;  %v509_v5 = vadd.f32 %v1154_v2, %v1036_v49  ;;  %v578_v2 = vld [vmem:[%s1822_s18 + $0x50] sm:$0xff] }
 0x167   : > { %v503_v6 = vpop.f32.mrf.mxu0 }
 0x168   : > { %v504_v7 = vadd.f32 %v1036_v49, %v503_v6  ;;  %1205 = vmatprep.mubr.f32.mxu1 %v556_v3  ;;  %v559_v10 = vmax.f32 %v509_v5, 0.0  ;;  %v581_v5 = vld [vmem:[%s1822_s18 + $0x68] sm:$0xff] }
 0x169   : > { %v1157_v8 = vpop.f32.mrf.mxu0  ;;  %1206 = vmatmul.mubr.f32.gmra.mxu1 %v557_v4 }
 0x16a   : > { %v558_v9 = vmax.f32 %v504_v7, 0.0  ;;  %v519_v11 = vadd.f32 %v1157_v8, %v1036_v49  ;;  %v580_v8 = vld [vmem:[%s1822_s18 + $0x60] sm:$0xff] }
 0x16b   : > { %v513_v12 = vpop.f32.mrf.mxu0 }
 0x16c   : > { %v514_v13 = vadd.f32 %v1036_v49, %v513_v12  ;;  %1208 = vmatprep.mubr.f32.mxu1 %v558_v9  ;;  %v561_v16 = vmax.f32 %v519_v11, 0.0  ;;  %v583_v11 = vld [vmem:[%s1822_s18 + $0x78] sm:$0xff] }
 0x16d   : > { %v1160_v14 = vpop.f32.mrf.mxu0  ;;  %1209 = vmatmul.mubr.f32.gmra.mxu1 %v559_v10 }
 0x16e   : > { %v560_v15 = vmax.f32 %v514_v13, 0.0  ;;  %v529_v17 = vadd.f32 %v1160_v14, %v1036_v49  ;;  %v582_v14 = vld [vmem:[%s1822_s18 + $0x70] sm:$0xff] }
 0x16f   : > { %v523_v18 = vpop.f32.mrf.mxu0 }
 0x170   : > { %v524_v19 = vadd.f32 %v1036_v49, %v523_v18  ;;  %1211 = vmatprep.mubr.f32.mxu1 %v560_v15  ;;  %v563_v22 = vmax.f32 %v529_v17, 0.0 }
 0x171   : > { %v1163_v20 = vpop.f32.mrf.mxu0  ;;  %1212 = vmatmul.mubr.f32.gmra.mxu1 %v561_v16 }
 0x172   : > { %v562_v21 = vmax.f32 %v524_v19, 0.0  ;;  %v539_v23 = vadd.f32 %v1163_v20, %v1036_v49 }
 0x173   : > { %v533_v24 = vpop.f32.mrf.mxu0 }
 0x174   : > { %v534_v25 = vadd.f32 %v1036_v49, %v533_v24  ;;  %1214 = vmatprep.mubr.f32.mxu1 %v562_v21  ;;  %v565_v28 = vmax.f32 %v539_v23, 0.0 }
 0x175   : > { %v1166_v26 = vpop.f32.mrf.mxu0  ;;  %1215 = vmatmul.mubr.f32.gmra.mxu1 %v563_v22 }
 0x176   : > { %v564_v27 = vmax.f32 %v534_v25, 0.0  ;;  %v549_v29 = vadd.f32 %v1166_v26, %v1036_v49 }
 0x177   : > { %v543_v30 = vpop.f32.mrf.mxu0 }
 0x178   : > { %v544_v31 = vadd.f32 %v1036_v49, %v543_v30  ;;  %1217 = vmatprep.mubr.f32.mxu1 %v564_v27  ;;  %v567_v33 = vmax.f32 %v549_v29, 0.0 }
 0x179   : > { %1218 = vmatmul.mubr.f32.gmra.mxu1 %v565_v28 }
 0x17a   : > { %v566_v32 = vmax.f32 %v544_v31, 0.0 }
 0x17c   : > { %1220 = vmatprep.mubr.f32.mxu1 %v566_v32 }
 0x17d   : > { %1221 = vmatmul.mubr.f32.gmra.mxu1 %v567_v33 }
 0x221   : > { %v1201_v35 = vpop.f32.mrf.mxu1 }
 0x222   : > { %v746_v37 = vadd.f32 %v1201_v35, %v569_v34 }
 0x223   : > { %v666_v38 = vpop.f32.mrf.mxu1 }
 0x224   : > { %762 = vst [vmem:[%s1822_s18 + $0x8] sm:$0xff] %v746_v37  ;;  %v745_v40 = vadd.f32 %v666_v38, %v568_v36 }
 0x225   : > { %v1204_v41 = vpop.f32.mrf.mxu1 }
 0x226   : > { %761 = vst [vmem:[%s1822_s18] sm:$0xff] %v745_v40  ;;  %v748_v43 = vadd.f32 %v1204_v41, %v571_v39 }
 0x227   : > { %v676_v44 = vpop.f32.mrf.mxu1 }
 0x228   : > { %764 = vst [vmem:[%s1822_s18 + $0x18] sm:$0xff] %v748_v43  ;;  %v747_v46 = vadd.f32 %v676_v44, %v570_v42 }
 0x229   : > { %v1207_v47 = vpop.f32.mrf.mxu1 }
 0x22a   : > { %763 = vst [vmem:[%s1822_s18 + $0x10] sm:$0xff] %v747_v46  ;;  %v750_v49 = vadd.f32 %v1207_v47, %v573_v45 }
 0x22b   : > { %v686_v50 = vpop.f32.mrf.mxu1 }
 0x22c   : > { %766 = vst [vmem:[%s1822_s18 + $0x28] sm:$0xff] %v750_v49  ;;  %v749_v52 = vadd.f32 %v686_v50, %v572_v48 }
 0x22d   : > { %v1210_v53 = vpop.f32.mrf.mxu1 }
 0x22e   : > { %765 = vst [vmem:[%s1822_s18 + $0x20] sm:$0xff] %v749_v52  ;;  %v752_v55 = vadd.f32 %v1210_v53, %v575_v51 }
 0x22f   : > { %v696_v56 = vpop.f32.mrf.mxu1 }
 0x230   : > { %768 = vst [vmem:[%s1822_s18 + $0x38] sm:$0xff] %v752_v55  ;;  %v751_v58 = vadd.f32 %v696_v56, %v574_v54 }
 0x231   : > { %v1213_v59 = vpop.f32.mrf.mxu1 }
 0x232   : > { %767 = vst [vmem:[%s1822_s18 + $0x30] sm:$0xff] %v751_v58  ;;  %v754_v61 = vadd.f32 %v1213_v59, %v577_v57 }
 0x233   : > { %v706_v62 = vpop.f32.mrf.mxu1 }
 0x234   : > { %770 = vst [vmem:[%s1822_s18 + $0x48] sm:$0xff] %v754_v61  ;;  %v753_v0 = vadd.f32 %v706_v62, %v576_v60 }
 0x235   : > { %v1216_v1 = vpop.f32.mrf.mxu1 }
 0x236   : > { %769 = vst [vmem:[%s1822_s18 + $0x40] sm:$0xff] %v753_v0  ;;  %v756_v3 = vadd.f32 %v1216_v1, %v579_v63 }
 0x237   : > { %v716_v4 = vpop.f32.mrf.mxu1 }
 0x238   : > { %772 = vst [vmem:[%s1822_s18 + $0x58] sm:$0xff] %v756_v3  ;;  %v755_v6 = vadd.f32 %v716_v4, %v578_v2 }
 0x239   : > { %v1219_v7 = vpop.f32.mrf.mxu1 }
 0x23a   : > { %771 = vst [vmem:[%s1822_s18 + $0x50] sm:$0xff] %v755_v6  ;;  %v758_v9 = vadd.f32 %v1219_v7, %v581_v5 }
 0x23b   : > { %v726_v10 = vpop.f32.mrf.mxu1 }
 0x23c   : > { %774 = vst [vmem:[%s1822_s18 + $0x68] sm:$0xff] %v758_v9  ;;  %v757_v12 = vadd.f32 %v726_v10, %v580_v8 }
 0x23d   : > { %v1222_v13 = vpop.f32.mrf.mxu1 }
 0x23e   : > { %773 = vst [vmem:[%s1822_s18 + $0x60] sm:$0xff] %v757_v12  ;;  %v760_v15 = vadd.f32 %v1222_v13, %v583_v11  ;;  %780 = sbr.rel (%p1037_p1) target bundleno = 596 (0x254), region = 60 }
 0x23f   : > { %v736_v16 = vpop.f32.mrf.mxu1 }
 0x240   : > { %776 = vst [vmem:[%s1822_s18 + $0x78] sm:$0xff] %v760_v15  ;;  %v759_v17 = vadd.f32 %v736_v16, %v582_v14 }
 0x242   : > { %775 = vst [vmem:[%s1822_s18 + $0x70] sm:$0xff] %v759_v17 }
 0x243   : > { %v781_v18 = vld [vmem:[%s1822_s18] sm:$0xff]  ;;  %v782_v22 = vld [vmem:[%s1822_s18 + $0x8] sm:$0xff]  ;;  %v783_v24 = vld [vmem:[%s1822_s18 + $0x10] sm:$0xff] }
 0x244   : > { %v1931_v19 = vld [vmem:[%s2113_s27] ss:$0 sm:$0xff]  ;;  %v821_v23 = vld [vmem:[%s1798_s13 + $0x8] sm:$0xff]  ;;  %v822_v27 = vld [vmem:[%s1798_s13 + $0x10] sm:$0xff] }
 0x245   : > { %v820_v20 = vld [vmem:[%s1798_s13] sm:$0xff]  ;;  %v804_v21 = vadd.f32 %v1931_v19, %v781_v18  ;;  %v805_v25 = vadd.f32 %v1931_v19, %v782_v22  ;;  %v806_v26 = vadd.f32 %v1931_v19, %v783_v24  ;;  %v784_v28 = vld [vmem:[%s1822_s18 + $0x18] sm:$0xff]  ;;  %v786_v34 = vld [vmem:[%s1822_s18 + $0x28] sm:$0xff] }
 0x246   : > { %v823_v29 = vld [vmem:[%s1798_s13 + $0x18] sm:$0xff]  ;;  %v807_v31 = vadd.f32 %v1931_v19, %v784_v28  ;;  %v785_v32 = vld [vmem:[%s1822_s18 + $0x20] sm:$0xff]  ;;  %v809_v38 = vadd.f32 %v1931_v19, %v786_v34  ;;  %v825_v39 = vld [vmem:[%s1798_s13 + $0x28] sm:$0xff] }
 0x247   : > { %v836_v30 = vadd.f32 %v820_v20, %v804_v21  ;;  %v824_v33 = vld [vmem:[%s1798_s13 + $0x20] sm:$0xff]  ;;  %v837_v35 = vadd.f32 %v821_v23, %v805_v25  ;;  %v838_v36 = vadd.f32 %v822_v27, %v806_v26  ;;  %v808_v37 = vadd.f32 %v1931_v19, %v785_v32  ;;  %v787_v40 = vld [vmem:[%s1822_s18 + $0x30] sm:$0xff]  ;;  %v788_v44 = vld [vmem:[%s1822_s18 + $0x38] sm:$0xff] }
 0x248   : > { %v826_v41 = vld [vmem:[%s1798_s13 + $0x30] sm:$0xff]  ;;  %v839_v42 = vadd.f32 %v823_v29, %v807_v31  ;;  %v810_v43 = vadd.f32 %v1931_v19, %v787_v40  ;;  %v827_v45 = vld [vmem:[%s1798_s13 + $0x38] sm:$0xff]  ;;  %v789_v46 = vld [vmem:[%s1822_s18 + $0x40] sm:$0xff]  ;;  %v841_v48 = vadd.f32 %v825_v39, %v809_v38  ;;  %v811_v49 = vadd.f32 %v1931_v19, %v788_v44 }
 0x249   : > { %852 = vst [vmem:[%s1822_s18] sm:$0xff] %v836_v30  ;;  %853 = vst [vmem:[%s1822_s18 + $0x8] sm:$0xff] %v837_v35  ;;  %v840_v47 = vadd.f32 %v824_v33, %v808_v37  ;;  %v812_v50 = vadd.f32 %v1931_v19, %v789_v46  ;;  %v828_v51 = vld [vmem:[%s1798_s13 + $0x40] sm:$0xff]  ;;  %v790_v52 = vld [vmem:[%s1822_s18 + $0x48] sm:$0xff] }
 0x24a   : > { %854 = vst [vmem:[%s1822_s18 + $0x10] sm:$0xff] %v838_v36  ;;  %v829_v53 = vld [vmem:[%s1798_s13 + $0x48] sm:$0xff]  ;;  %855 = vst [vmem:[%s1822_s18 + $0x18] sm:$0xff] %v839_v42  ;;  %v842_v54 = vadd.f32 %v826_v41, %v810_v43  ;;  %v813_v55 = vadd.f32 %v1931_v19, %v790_v52  ;;  %v791_v56 = vld [vmem:[%s1822_s18 + $0x50] sm:$0xff]  ;;  %v843_v59 = vadd.f32 %v827_v45, %v811_v49 }
 0x24b   : > { %v830_v57 = vld [vmem:[%s1798_s13 + $0x50] sm:$0xff]  ;;  %v792_v58 = vld [vmem:[%s1822_s18 + $0x58] sm:$0xff]  ;;  %856 = vst [vmem:[%s1822_s18 + $0x20] sm:$0xff] %v840_v47  ;;  %857 = vst [vmem:[%s1822_s18 + $0x28] sm:$0xff] %v841_v48  ;;  %v844_v60 = vadd.f32 %v828_v51, %v812_v50  ;;  %v814_v61 = vadd.f32 %v1931_v19, %v791_v56 }
 0x24c   : > { %v815_v62 = vadd.f32 %v1931_v19, %v792_v58  ;;  %v831_v63 = vld [vmem:[%s1798_s13 + $0x58] sm:$0xff]  ;;  %v793_v0 = vld [vmem:[%s1822_s18 + $0x60] sm:$0xff]  ;;  %858 = vst [vmem:[%s1822_s18 + $0x30] sm:$0xff] %v842_v54  ;;  %v845_v2 = vadd.f32 %v829_v53, %v813_v55  ;;  %v794_v4 = vld [vmem:[%s1822_s18 + $0x68] sm:$0xff] }
 0x24d   : > { %v832_v1 = vld [vmem:[%s1798_s13 + $0x60] sm:$0xff]  ;;  %v816_v3 = vadd.f32 %v1931_v19, %v793_v0  ;;  %v833_v5 = vld [vmem:[%s1798_s13 + $0x68] sm:$0xff]  ;;  %v795_v6 = vld [vmem:[%s1822_s18 + $0x70] sm:$0xff]  ;;  %859 = vst [vmem:[%s1822_s18 + $0x38] sm:$0xff] %v843_v59  ;;  %v846_v7 = vadd.f32 %v830_v57, %v814_v61  ;;  %v817_v9 = vadd.f32 %v1931_v19, %v794_v4 }
 0x24e   : > { %860 = vst [vmem:[%s1822_s18 + $0x40] sm:$0xff] %v844_v60  ;;  %v847_v8 = vadd.f32 %v831_v63, %v815_v62  ;;  %v818_v10 = vadd.f32 %v1931_v19, %v795_v6  ;;  %v834_v11 = vld [vmem:[%s1798_s13 + $0x70] sm:$0xff]  ;;  %v796_v12 = vld [vmem:[%s1822_s18 + $0x78] sm:$0xff]  ;;  %861 = vst [vmem:[%s1822_s18 + $0x48] sm:$0xff] %v845_v2 }
 0x24f   : > { %v835_v13 = vld [vmem:[%s1798_s13 + $0x78] sm:$0xff]  ;;  %v848_v14 = vadd.f32 %v832_v1, %v816_v3  ;;  %v819_v15 = vadd.f32 %v1931_v19, %v796_v12  ;;  %862 = vst [vmem:[%s1822_s18 + $0x50] sm:$0xff] %v846_v7  ;;  %v849_v16 = vadd.f32 %v833_v5, %v817_v9 }
 0x250   : > { %863 = vst [vmem:[%s1822_s18 + $0x58] sm:$0xff] %v847_v8  ;;  %v850_v17 = vadd.f32 %v834_v11, %v818_v10 }
 0x251   : > { %864 = vst [vmem:[%s1822_s18 + $0x60] sm:$0xff] %v848_v14  ;;  %v851_v18 = vadd.f32 %v835_v13, %v819_v15  ;;  %865 = vst [vmem:[%s1822_s18 + $0x68] sm:$0xff] %v849_v16 }
 0x252   : > { %866 = vst [vmem:[%s1822_s18 + $0x70] sm:$0xff] %v850_v17 }
 0x253   : > { %867 = vst [vmem:[%s1822_s18 + $0x78] sm:$0xff] %v851_v18 }
 0x254 PF: > { %s2114_s24 = sld [smem:[#allocation14_spill]]  ;;  %s882_s6 = sshll.u32 %s1822_s18, 4  ;;  %s2003_s6 = int_to_ptr.vmem [resolvable:$true] %s882_s6 }
 0x255   : > { %s2116_s13 = sld [smem:[#allocation24_spill]]  ;;  %s869_s7 = scalar_lea.sflag [#allocation4], %s1794_s0 }
 0x256   : > { %s1425_s1 = scalar_lea.vmem %s2003_s6, 2048  ;;  %s1558_s14 = smov [#allocation8]  }
 0x257   : > { %p1426_p10 = scmp.ne.s32.totalorder %s2003_s6, %s1425_s1  ;;  %s1429_s29 = sshll.u32 %s1558_s14, 4  ;;  %s1430_s29 = int_to_ptr.vmem [resolvable:$false] %s1429_s29 }
 0x258   : > { %s1431_s30 = scalar_lea.vmem %s1430_s29, 4096  ;;  %p1432_p8 = scmp.lt.s32.totalorder %s2003_s6, %s1430_s29 }
 0x259   : > { %p1427_p3 = pnand %p1426_p10, %p1743_p0  ;;  %p1433_p9 = scmp.lt.s32.totalorder %s1431_s30, %s1425_s1 }
 0x25a   : > { %s1046_s25 = sshll.u32 %s2114_s24, 11 }
 0x25b   : > { %s2000_s5 = scalar_lea.hbm %s2116_s13, %s1046_s25  ;;  %p1428_p5 = pneg %p1427_p3 }
 0x25c   : > { %p1434_p13 = por %p1433_p9, %p1432_p8 }
 0x25e   : > { %p1435_p2 = pnand %p1434_p13, %p1428_p5 }
 0x260   : > { %1438 = shalt.err (!%p1435_p2)
}
 0x261   : > { %s1439_s15 = scalar_lea.hbm %s2000_s5, 2048  ;;  %s1443_s18 = scalar_lea.hbm %s2116_s13, 4096 }
 0x262   : > { %p1440_p12 = scmp.ne.s32.totalorder %s2000_s5, %s1439_s15  ;;  %p1444_p7 = scmp.lt.s32.totalorder %s2000_s5, %s2116_s13 }
 0x263   : > { %p1445_p11 = scmp.lt.s32.totalorder %s1443_s18, %s1439_s15 }
 0x264   : > { %p1441_p6 = pnand %p1440_p12, %p1743_p0 }
 0x265   : > { %p1446_p1 = por %p1445_p11, %p1444_p7 }
 0x266   : > { %p1442_p4 = pneg %p1441_p6 }
 0x268   : > { %p1447_p10 = pnand %p1446_p1, %p1442_p4 }
 0x26a   : > { %1450 = shalt.err (!%p1447_p10)
}
 0x26b   : > { %s1559_s9 = smov 128   ;;  %s1560_s4 = smov 8  }
 0x26c   : > { %1229 = dma.vmem_to_hbm [thread:$0]  (%p1743_p0), %s2003_s6, 2048, %s2000_s5, %s869_s7, %s1559_s9, %s1559_s9, %s1560_s4  }
 0x26d PF: > { %p1246_p3 = scmp.ge.s32.totalorder %s1549_s28, 2  ;;  %s897_s27 = sand.u32 1, %s1521_s21  }
 0x26e   : > { %p2117_p5 = scmp.ne.s32.totalorder %s2106_s20, 0  ;;  %s898_s24 = scalar_lea.sflag [#allocation4], %s897_s27 }
 0x270   : > { %p1242_p8 = pnand %p1246_p3, %p2117_p5 }
 0x272   : > { %p1243_p9 = pneg %p1242_p8 }
 0x274   : > { %1504 = dma.done.wait (%p1243_p9), %s898_s24, 2048  }
 0x275   : > { %1506 = vsyncadd (%p1243_p9), %s898_s24, 4294965248  ;;  %s24_s28 = sadd.s32 1, %s1549_s28   ;;  %s2118_s25 = sld [smem:[#allocation12_spill]] }
 0x276   : > { %p21_p13 = scmp.ge.s32.totalorder %s24_s28, 6   ;;  %s2119_s20 = sld [smem:[#allocation17_spill]] }
 0x277   : > { %s2120_s0 = sld [smem:[#allocation13_spill]]  ;;  %s2125_s18 = smov %s1513_s19 }
 0x278   : > { %s2121_s23 = sld [smem:[#allocation20_spill]]  ;;  %s2127_s21 = smov %s1525_s22 }
 0x279   : > { %s2122_s8 = sld [smem:[#allocation15_spill]]  ;;  %s2129_s24 = smov %s1541_s26 }
 0x27a   : > { %s2123_s11 = sld [smem:[#allocation16_spill]] }
 0x27b   : > { %s2124_s27 = sld [smem:[#allocation18_spill]]  ;;  %s2126_s19 = smov %s2118_s25 }
 0x27c   :  { %23 = sbr.rel (!%p21_p13) target bundleno = 16 (0x10), region = 120 }
 0x27d   : > { %s2128_s22 = smov %s2120_s0 }
 0x27f   : > { %s2130_s25 = smov %s2122_s8 }
 0x280   : > { %s2131_s26 = smov %s2123_s11 }
 0x281   :  { %903 = vsyncpa [#allocation3], 1 }
 0x282   :  { %905 = vsyncpa [#allocation3 + $0x1], 1 }
 0x283   :  { %906 = vsyncpa [#allocation6], 1 }
 0x284   :  { %908 = vsyncpa [#allocation6 + $0x1], 1 }
 0x285   :  { %909 = vsyncpa [#allocation4], 1 }
 0x286   :  { %911 = vsyncpa [#allocation4 + $0x1], 1 }

</bundles_post_ra>
